<compile_context>
chip_gen: v7x
topology: tpu7x:2x2x1
jax: 0.10.0
libtpu: 0.0.40
codegen_flags: <defaults>
</compile_context>

<pallas_src>
import jax
import jax.numpy as jnp
from jax.experimental import pallas as pl
from jax.experimental.pallas import tpu as pltpu


def swem_kernel(x_ref, w1_ref, b1_ref, w2_ref, b2_ref, o_ref):
    # fc1: (TILE_B, 300) @ (300, 128) on the MXU, f32 accumulate.
    h = jnp.dot(x_ref[...], w1_ref[...], preferred_element_type=jnp.float32)
    # bias + ReLU on the VPU (padded lanes are 0 + 0 -> stay 0).
    h = jnp.maximum(h + b1_ref[...], 0.0)
    # fc2 as a lane-wise multiply + reduction (avoids an N=1 MXU matmul);
    # padded lanes of w2 are zero so they do not contribute.
    y = jnp.sum(h * w2_ref[...], axis=-1, keepdims=True) + b2_ref[...]
    o_ref[...] = y.astype(o_ref.dtype)


def swem_forward(x, w1, b1, w2, b2, *, tile_b=4096):
    """x: (B, 300) f32; w1: (300, 64); b1: (64,); w2: (64, 1); b2: (1,)."""
    B, K = x.shape
    H = w1.shape[1]
    H_pad = ((H + 127) // 128) * 128  # pad hidden dim to a full 128-lane width

    # Pre-transposed / padded weights so the kernel is lane-dense.
    w1p = jnp.zeros((K, H_pad), jnp.float32).at[:, :H].set(w1)
    b1p = jnp.zeros((1, H_pad), jnp.float32).at[:, :H].set(b1)
    w2p = jnp.zeros((1, H_pad), jnp.float32).at[:, :H].set(w2.reshape(1, H))
    b2p = b2.reshape(1, 1).astype(jnp.float32)

    # Batch tile: multiple of 8 sublanes, never larger than (rounded-up) B.
    tile_b = max(8, min(tile_b, ((B + 7) // 8) * 8))
    b_pad = pl.cdiv(B, tile_b) * tile_b
    if b_pad != B:
        x = jnp.pad(x, ((0, b_pad - B), (0, 0)))

    grid = (b_pad // tile_b,)
    out = pl.pallas_call(
        swem_kernel,
        out_shape=jax.ShapeDtypeStruct((b_pad, 1), jnp.float32),
        grid=grid,
        in_specs=[
            # x: streamed batch tiles (double-buffered by the pipeline).
            pl.BlockSpec((tile_b, K), lambda i: (i, 0)),
            # weights / biases: constant index_map -> DMA'd once, VMEM-resident.
            pl.BlockSpec((K, H_pad), lambda i: (0, 0)),
            pl.BlockSpec((1, H_pad), lambda i: (0, 0)),
            pl.BlockSpec((1, H_pad), lambda i: (0, 0)),
            pl.BlockSpec((1, 1), lambda i: (0, 0)),
        ],
        out_specs=pl.BlockSpec((tile_b, 1), lambda i: (i, 0)),
        compiler_params=pltpu.CompilerParams(
            dimension_semantics=("parallel",),          # megacore on v7x
            vmem_limit_bytes=32 * 1024 * 1024,          # > v5e's 16 MiB default
        ),
    )(x, w1p, b1p, w2p, b2p)
    return out[:B]


def init_params(key):
    # Deterministic init mimicking nn.Linear defaults (uniform +/- 1/sqrt(fan_in)).
    k1, k2, k3, k4 = jax.random.split(key, 4)
    bound1 = 1.0 / jnp.sqrt(300.0)
    bound2 = 1.0 / jnp.sqrt(64.0)
    w1 = jax.random.uniform(k1, (300, 64), jnp.float32, -bound1, bound1)
    b1 = jax.random.uniform(k2, (64,), jnp.float32, -bound1, bound1)
    w2 = jax.random.uniform(k3, (64, 1), jnp.float32, -bound2, bound2)
    b2 = jax.random.uniform(k4, (1,), jnp.float32, -bound2, bound2)
    return w1, b1, w2, b2


if __name__ == "__main__":
    key = jax.random.PRNGKey(0)
    kx, kp = jax.random.split(key)
    B = 8
    x = jax.random.normal(kx, (B, 300), jnp.float32)
    w1, b1, w2, b2 = init_params(kp)

    out = swem_forward(x, w1, b1, w2, b2)
    out = jax.block_until_ready(out)

    # Reference check in plain JAX (same math as the PyTorch module).
    ref = jnp.maximum(x @ w1 + b1, 0.0) @ w2 + b2
    assert out.shape == (B, 1)
    assert jnp.allclose(out, ref, atol=1e-5, rtol=1e-5)
    print("KERNEL_OK")
</pallas_src>

<mosaic_0001>
module attributes {stable_mosaic.version = 11 : i64} {
  func.func @swem_kernel(%arg0: i32, %arg1: memref<8x300xf32, #tpu.memory_space<vmem>>, %arg2: memref<300x128xf32, #tpu.memory_space<vmem>>, %arg3: memref<1x128xf32, #tpu.memory_space<vmem>>, %arg4: memref<1x128xf32, #tpu.memory_space<vmem>>, %arg5: memref<1x1xf32, #tpu.memory_space<vmem>>, %arg6: memref<8x1xf32, #tpu.memory_space<vmem>>) attributes {dimension_semantics = [#tpu.dimension_semantics<parallel>], iteration_bounds = array<i64: 1>, scalar_prefetch = 0 : i64, scratch_operands = 0 : i64, tpu.core_type = #tpu.core_type<tc>, window_params = [{transform_indices = @transform_0, window_bounds = array<i64: 8, 300>}, {pipeline_mode = #tpu.pipeline_mode<synchronous>, transform_indices = @transform_1, window_bounds = array<i64: 300, 128>}, {pipeline_mode = #tpu.pipeline_mode<synchronous>, transform_indices = @transform_2, window_bounds = array<i64: 1, 128>}, {pipeline_mode = #tpu.pipeline_mode<synchronous>, transform_indices = @transform_3, window_bounds = array<i64: 1, 128>}, {pipeline_mode = #tpu.pipeline_mode<synchronous>, transform_indices = @transform_4, window_bounds = array<i64: 1, 1>}, {transform_indices = @transform_5, window_bounds = array<i64: 8, 1>}]} {
    %c0 = arith.constant 0 : index
    %c0_0 = arith.constant 0 : index
    %0 = vector.load %arg1[%c0, %c0_0] : memref<8x300xf32, #tpu.memory_space<vmem>>, vector<8x300xf32>
    %c0_1 = arith.constant 0 : index
    %c0_2 = arith.constant 0 : index
    %1 = vector.load %arg2[%c0_1, %c0_2] : memref<300x128xf32, #tpu.memory_space<vmem>>, vector<300x128xf32>
    %cst = arith.constant dense<0.000000e+00> : vector<8x128xf32>
    %2 = tpu.matmul %0, %1, %cst {dimension_numbers = #tpu.dot_dimension_numbers<[1], [0], [0], [1], [0, 0, 1, 1], [], []>} : vector<8x300xf32>, vector<300x128xf32>, vector<8x128xf32> -> vector<8x128xf32>
    %c0_3 = arith.constant 0 : index
    %c0_4 = arith.constant 0 : index
    %3 = vector.load %arg3[%c0_3, %c0_4] : memref<1x128xf32, #tpu.memory_space<vmem>>, vector<1x128xf32>
    %4 = vector.broadcast %3 : vector<1x128xf32> to vector<8x128xf32>
    %5 = arith.addf %2, %4 : vector<8x128xf32>
    %cst_5 = arith.constant 0.000000e+00 : f32
    %6 = vector.broadcast %cst_5 : f32 to vector<8x128xf32>
    %7 = arith.maximumf %5, %6 : vector<8x128xf32>
    %c0_6 = arith.constant 0 : index
    %c0_7 = arith.constant 0 : index
    %8 = vector.load %arg4[%c0_6, %c0_7] : memref<1x128xf32, #tpu.memory_space<vmem>>, vector<1x128xf32>
    %9 = vector.broadcast %8 : vector<1x128xf32> to vector<8x128xf32>
    %10 = arith.mulf %7, %9 : vector<8x128xf32>
    %cst_8 = arith.constant dense<0.000000e+00> : vector<8xf32>
    %11 = vector.multi_reduction <add>, %10, %cst_8 [1] : vector<8x128xf32> to vector<8xf32>
    %12 = vector.shape_cast %11 : vector<8xf32> to vector<8x1xf32>
    %c0_9 = arith.constant 0 : index
    %c0_10 = arith.constant 0 : index
    %13 = vector.load %arg5[%c0_9, %c0_10] : memref<1x1xf32, #tpu.memory_space<vmem>>, vector<1x1xf32>
    %14 = vector.broadcast %13 : vector<1x1xf32> to vector<8x1xf32>
    %15 = arith.addf %12, %14 : vector<8x1xf32>
    %c0_11 = arith.constant 0 : index
    %c0_12 = arith.constant 0 : index
    %16 = vector.load %arg6[%c0_11, %c0_12] : memref<8x1xf32, #tpu.memory_space<vmem>>, vector<8x1xf32>
    tpu.vector_store %arg6[%c0_11, %c0_12], %15 {strides = array<i32>} : memref<8x1xf32, #tpu.memory_space<vmem>>, vector<8x1xf32>,
    return
  }
  func.func @transform_0(%arg0: i32) -> (i32, i32) {
    %c0_i32 = arith.constant 0 : i32
    %c0_i32_0 = arith.constant 0 : i32
    return %arg0, %c0_i32 : i32, i32
  }
  func.func @transform_1(%arg0: i32) -> (i32, i32) {
    %c0_i32 = arith.constant 0 : i32
    %c0_i32_0 = arith.constant 0 : i32
    %c0_i32_1 = arith.constant 0 : i32
    return %c0_i32, %c0_i32_0 : i32, i32
  }
  func.func @transform_2(%arg0: i32) -> (i32, i32) {
    %c0_i32 = arith.constant 0 : i32
    %c0_i32_0 = arith.constant 0 : i32
    %c0_i32_1 = arith.constant 0 : i32
    return %c0_i32, %c0_i32_0 : i32, i32
  }
  func.func @transform_3(%arg0: i32) -> (i32, i32) {
    %c0_i32 = arith.constant 0 : i32
    %c0_i32_0 = arith.constant 0 : i32
    %c0_i32_1 = arith.constant 0 : i32
    return %c0_i32, %c0_i32_0 : i32, i32
  }
  func.func @transform_4(%arg0: i32) -> (i32, i32) {
    %c0_i32 = arith.constant 0 : i32
    %c0_i32_0 = arith.constant 0 : i32
    %c0_i32_1 = arith.constant 0 : i32
    return %c0_i32, %c0_i32_0 : i32, i32
  }
  func.func @transform_5(%arg0: i32) -> (i32, i32) {
    %c0_i32 = arith.constant 0 : i32
    %c0_i32_0 = arith.constant 0 : i32
    return %arg0, %c0_i32 : i32, i32
  }
}

</mosaic_0001>

<bundles_post_ra>
// kernel: tpu_custom_call.1
= control target key start
LH: loop header
LB: loop body
LE: loop exit
PB: predicated region body
PF: predicated region fallthrough
CT: control target
= control target key end

     0   :  { %s515_s0 = inlined_call_operand.hbm [shape: f32[8,300], index: 0, kind: input, shape index: {}]   ;;  %s516_s1 = inlined_call_operand.hbm [shape: f32[300,128], index: 1, kind: input, shape index: {}]   ;;  %s517_s2 = inlined_call_operand.vmem [shape: f32[1,128], index: 2, kind: input, shape index: {}]   ;;  %s518_s3 = inlined_call_operand.vmem [shape: f32[1,128], index: 3, kind: input, shape index: {}]   ;;  %s519_s4 = inlined_call_operand.<no memory space> [shape: f32[1,1], index: 4, kind: input, shape index: {}]   ;;  %s520_s5 = inlined_call_operand.vmem [shape: f32[8,1], index: 5, kind: output, shape index: {}]  }
   0x1   :  { %v10_v0 = vstv %s519_s4 }
   0x2   :  { %11 = vst [vmem:[#allocation2] sm:$0x1] %v10_v0 }
   0x3   :  { %12 = vsyncpa [#allocation4], 0 }
   0x4   :  { %13 = vsyncpa [#allocation6], 0  ;;  %s431_s20 = smov [#allocation3]   ;;  %s432_s22 = smov [#allocation5]  }
   0x5   :  { %s20_s21 = sshll.u32 %s431_s20, 4  ;;  %s29_s23 = sshll.u32 %s432_s22, 4  ;;  %s21_s21 = int_to_ptr.vmem [resolvable:$true] %s20_s21  ;;  %s472_s23 = int_to_ptr.vmem [resolvable:$true] %s29_s23 }
   0x6   :  { %s383_s26 = scalar_lea.hbm %s515_s0, 384 }
   0x7   :  { %p384_p0 = scmp.ne.s32.totalorder %s515_s0, %s383_s26  ;;  %p387_p1 = scmp.lt.u32.totalorder %s383_s26, %s515_s0 }
   0x9   :  { %p389_p2 = pnand %p387_p1, %p384_p0 }
   0xb   :  { %392 = shalt.err (!%p389_p2)
}
   0xc   :  { %s393_s30 = scalar_lea.vmem %s21_s21, 384  ;;  %p398_p4 = scmp.lt.s32.totalorder %s21_s21, %s21_s21 }
   0xd   :  { %p394_p3 = scmp.ne.s32.totalorder %s21_s21, %s393_s30  ;;  %p399_p5 = scmp.lt.s32.totalorder %s393_s30, %s393_s30 }
   0xf   :  { %p400_p6 = por %p399_p5, %p398_p4 }
  0x11   :  { %p401_p7 = pnand %p400_p6, %p394_p3 }
  0x13   :  { %404 = shalt.err (!%p401_p7)
}
  0x14   :  { %23 = dma.hbm_to_vmem [thread:$0]  %s515_s0, 384, %s21_s21, [#allocation4]  }
  0x15   :  { %s405_s10 = scalar_lea.hbm %s516_s1, 4864 }
  0x16   :  { %p406_p8 = scmp.ne.s32.totalorder %s516_s1, %s405_s10  ;;  %p409_p9 = scmp.lt.u32.totalorder %s405_s10, %s516_s1 }
  0x18   :  { %p411_p10 = pnand %p409_p9, %p406_p8 }
  0x1a   :  { %414 = shalt.err (!%p411_p10)
}
  0x1b   :  { %s415_s15 = scalar_lea.vmem %s472_s23, 4864  ;;  %p420_p12 = scmp.lt.s32.totalorder %s472_s23, %s472_s23 }
  0x1c   :  { %p416_p11 = scmp.ne.s32.totalorder %s472_s23, %s415_s15  ;;  %p421_p13 = scmp.lt.s32.totalorder %s415_s15, %s415_s15 }
  0x1e   :  { %p422_p0 = por %p421_p13, %p420_p12 }
  0x20   :  { %p423_p1 = pnand %p422_p0, %p416_p11 }
  0x22   :  { %426 = shalt.err (!%p423_p1)
}
  0x23   :  { %s433_s0 = smov 128   ;;  %s434_s16 = smov 8  }
  0x24   :  { %35 = dma.hbm_to_vmem [thread:$0]  %s516_s1, 4864, %s472_s23, [#allocation6], %s433_s0, %s433_s0, %s434_s16  }
  0x25   :  { %427 = dma.done.wait [#allocation4], 384  }
  0x26   :  { %428 = vsyncadd [#allocation4], 4294966912 }
  0x27   :  { %429 = dma.done.wait [#allocation6], 4864  }
  0x28   :  { %430 = vsyncadd [#allocation6], 4294962432  ;;  %v435_v1 = vmov 0.0|0.0   ;;  %vm436_vm0 = vmmov 0   ;;  %v437_v2 = vmov 0.0   ;;  %v67_v3 = vld [vmem:[#allocation5 + $0x80] sm:$0xff] }
  0x29   :  { %365 = vmatprep.subr.bf16.mxu1 %v435_v1  ;;  %330 = vmatprep.mubr.msk.f32.mxu1 %vm436_vm0, %v437_v2  ;;  %v68_v4 = vld [vmem:[#allocation5 + $0x88] sm:$0xff]  ;;  %v51_v5 = vld [vmem:[#allocation5] sm:$0xff]  ;;  %v69_v8 = vld [vmem:[#allocation5 + $0x90] sm:$0xff]  ;;  %vm100_vm1 = vcmask 1043456   ;;  %vm438_vm2 = vmmov 1   ;;  %vm96_vm4 = vcmask 359424  }
  0x2a   :  { %v333_v6 = vpack.c.bf16 %v68_v4, %v67_v3  ;;  %v52_v7 = vld [vmem:[#allocation5 + $0x8] sm:$0xff]  ;;  %v70_v9 = vld [vmem:[#allocation5 + $0x98] sm:$0xff]  ;;  %v53_v12 = vld [vmem:[#allocation5 + $0x10] sm:$0xff]  ;;  %vm263_vm5 = vcmask 7168  }
  0x2b   :  { %v335_v10 = vpack.c.bf16 %v52_v7, %v51_v5  ;;  %v337_v11 = vpack.c.bf16 %v70_v9, %v69_v8  ;;  %v54_v13 = vld [vmem:[#allocation5 + $0x18] sm:$0xff]  ;;  %v71_v14 = vld [vmem:[#allocation5 + $0xa0] sm:$0xff]  ;;  %v72_v15 = vld [vmem:[#allocation5 + $0xa8] sm:$0xff] }
  0x2c   :  { %334 = vmatprep.subr.bf16.mxu0 %v333_v6  ;;  %v339_v16 = vpack.c.bf16 %v54_v13, %v53_v12  ;;  %v341_v17 = vpack.c.bf16 %v72_v15, %v71_v14  ;;  %v55_v18 = vld [vmem:[#allocation5 + $0x20] sm:$0xff]  ;;  %v56_v19 = vld [vmem:[#allocation5 + $0x28] sm:$0xff]  ;;  %v73_v20 = vld [vmem:[#allocation5 + $0xb0] sm:$0xff] }
  0x2d   :  { %336 = vmatpush3.bf16.msra.mxu0 %v335_v10  ;;  %v74_v21 = vld [vmem:[#allocation5 + $0xb8] sm:$0xff]  ;;  %v343_v22 = vpack.c.bf16 %v56_v19, %v55_v18  ;;  %v57_v23 = vld [vmem:[#allocation5 + $0x30] sm:$0xff]  ;;  %v83_v26 = vld [vmem:[#allocation5 + $0x100] sm:$0xff] }
  0x2e   :  { %338 = vmatprep.subr.bf16.mxu0 %v337_v11  ;;  %v345_v24 = vpack.c.bf16 %v74_v21, %v73_v20  ;;  %v58_v25 = vld [vmem:[#allocation5 + $0x38] sm:$0xff]  ;;  %v84_v27 = vld [vmem:[#allocation5 + $0x108] sm:$0xff]  ;;  %v75_v28 = vld [vmem:[#allocation5 + $0xc0] sm:$0xff] }
  0x2f   :  { %v76_v29 = vld [vmem:[#allocation5 + $0xc8] sm:$0xff]  ;;  %v366_v30 = vpack.c.bf16 %v84_v27, %v83_v26  ;;  %v85_v31 = vld [vmem:[#allocation5 + $0x110] sm:$0xff]  ;;  %v86_v32 = vld [vmem:[#allocation5 + $0x118] sm:$0xff]  ;;  %v347_v33 = vpack.c.bf16 %v58_v25, %v57_v23 }
  0x30   :  { %v59_v34 = vld [vmem:[#allocation5 + $0x40] sm:$0xff]  ;;  %v369_v35 = vpack.c.bf16 %v86_v32, %v85_v31  ;;  %v49_v36 = vld [vmem:[#allocation3 + $0x8] sm:$0xff]  ;;  %v349_v37 = vpack.c.bf16 %v76_v29, %v75_v28  ;;  %v60_v38 = vld [vmem:[#allocation5 + $0x48] sm:$0xff] }
  0x31   :  { %340 = vmatpush3.bf16.msra.mxu0 %v339_v16  ;;  %367 = vmatpush3.bf16.msra.mxu1 %v366_v30  ;;  %v87_v39 = vld [vmem:[#allocation5 + $0x120] sm:$0xff]  ;;  %v88_v40 = vld [vmem:[#allocation5 + $0x128] sm:$0xf]  ;;  %v77_v41 = vld [vmem:[#allocation5 + $0xd0] sm:$0xff]  ;;  %v351_v43 = vpack.c.bf16 %v60_v38, %v59_v34 }
  0x32   :  { %342 = vmatprep.subr.bf16.mxu0 %v341_v17  ;;  %368 = vmatprep.subr.bf16.mxu1 %v435_v1  ;;  %v78_v42 = vld [vmem:[#allocation5 + $0xd8] sm:$0xff]  ;;  %v372_v44 = vpack.c.bf16 %v88_v40, %v87_v39  ;;  %v61_v46 = vld [vmem:[#allocation5 + $0x50] sm:$0xff]  ;;  %vm373_vm3 = vmpackc.low %vm100_vm1, %vm438_vm2 }
  0x33   :  { %168 = vmatprep.mubr.f32.mxu0 %v49_v36  ;;  %v353_v45 = vpack.c.bf16 %v78_v42, %v77_v41  ;;  %v62_v47 = vld [vmem:[#allocation5 + $0x58] sm:$0xff]  ;;  %v79_v48 = vld [vmem:[#allocation5 + $0xe0] sm:$0xff]  ;;  %v80_v49 = vld [vmem:[#allocation5 + $0xe8] sm:$0xff] }
  0x34   :  { %v355_v50 = vpack.c.bf16 %v62_v47, %v61_v46  ;;  %v50_v51 = vld [vmem:[#allocation3 + $0x10] sm:$0xff]  ;;  %v357_v52 = vpack.c.bf16 %v80_v49, %v79_v48  ;;  %v63_v53 = vld [vmem:[#allocation5 + $0x60] sm:$0xff]  ;;  %v64_v54 = vld [vmem:[#allocation5 + $0x68] sm:$0xff] }
  0x35   :  { %344 = vmatpush3.bf16.msra.mxu0 %v343_v22  ;;  %370 = vmatpush3.bf16.msra.mxu1 %v369_v35  ;;  %v81_v55 = vld [vmem:[#allocation5 + $0xf0] sm:$0xff]  ;;  %v82_v56 = vld [vmem:[#allocation5 + $0xf8] sm:$0xff]  ;;  %v359_v57 = vpack.c.bf16 %v64_v54, %v63_v53  ;;  %v48_v62 = vld [vmem:[#allocation3] sm:$0xff] }
  0x36   :  { %346 = vmatprep.subr.bf16.mxu0 %v345_v24  ;;  %371 = vmatprep.subr.bf16.mxu1 %v435_v1  ;;  %v361_v58 = vpack.c.bf16 %v82_v56, %v81_v55  ;;  %v65_v59 = vld [vmem:[#allocation5 + $0x70] sm:$0xff]  ;;  %v66_v60 = vld [vmem:[#allocation5 + $0x78] sm:$0xff]  ;;  %v271_v3 = vld [vmem:[%s517_s2] ss:$0 sm:$0xff] }
  0x37   :  { %v363_v61 = vpack.c.bf16 %v66_v60, %v65_v59  ;;  %v274_v7 = vld [vmem:[%s518_s3] ss:$0 sm:$0xff] }
  0x38   :  { %v275_v10 = vld [vmem:[#allocation2] ss:$0 sm:$0xff] }
  0x39   :  { %348 = vmatpush3.bf16.msra.mxu0 %v347_v33  ;;  %374 = vmatpush3.bf16.msk.msra.mxu1 %vm373_vm3, %v372_v44 }
  0x3a   :  { %350 = vmatprep.subr.bf16.mxu0 %v349_v37 }
  0x3c   :  { %331 = vmatmul.mubr.msk.f32.vlgmr.msra.gmra.mrb[0].mxu1 %vm96_vm4, %v50_v51 }
  0x3d   :  { %352 = vmatpush3.bf16.msra.mxu0 %v351_v43 }
  0x3e   :  { %354 = vmatprep.subr.bf16.mxu0 %v353_v45 }
  0x41   :  { %356 = vmatpush3.bf16.msra.mxu0 %v355_v50 }
  0x42   :  { %358 = vmatprep.subr.bf16.mxu0 %v357_v52 }
  0x45   :  { %360 = vmatpush3.bf16.msra.mxu0 %v359_v57 }
  0x46   :  { %362 = vmatprep.subr.bf16.mxu0 %v361_v58 }
  0x49   :  { %364 = vmatpush3.bf16.msra.mxu0 %v363_v61 }
  0x4c   :  { %169 = vmatmul.mubr.f32.vlgmr.msra.gmra.mrb[0].mxu0 %v48_v62 }
 0x10f   :  { %v240_v63 = vpop.f32.mrb[0].mxu1 }
 0x110   :  { %v332_v0 = vpop.f32.mrb[1].mxu1 }
 0x11f   :  { %v308_v1 = vpop.f32.mrb[0].mxu0 }
 0x120   :  { %v309_v2 = vpop.f32.mrb[1].mxu0 }
 0x121   :  { %v310_v4 = vadd.f32 %v309_v2, %v308_v1 }
 0x123   :  { %v171_v5 = vadd.f32 %v310_v4, %v271_v3 }
 0x125   :  { %v241_v6 = vadd.f32 %v240_v63, %v171_v5 }
 0x127   :  { %v244_v8 = vmax.f32 %v241_v6, 0.0 }
 0x129   :  { %v252_v9 = vmul.f32 %v274_v7, %v244_v8 }
 0x12b   :  { %253 = vadd.xlane.f32.xlu0 %v252_v9 }
 0x1b8   :  { %v254_v11 = vpop.xlane.xlu0 %253 }
 0x1b9   :  { %v262_v12 = vadd.f32 %v275_v10, %v254_v11 }
 0x1bb   :  { %264 = vst.msk [vmem:[%s520_s5] sm:$0xff] %vm263_vm5, %v262_v12 }
 0x1bc   :  { %269 = vsyncpa [#allocation4], 1 }
 0x1bd   :  { %270 = vsyncpa [#allocation6], 1 }

</bundles_post_ra>
